<compile_context>
chip_gen: v7x
topology: tpu7x:2x2x1
jax: 0.10.0
libtpu: 0.0.40
codegen_flags: <defaults>
</compile_context>

<pallas_src>
import math

import jax
import jax.numpy as jnp
from jax.experimental import pallas as pl
from jax.experimental.pallas import tpu as pltpu


# ---------------------------------------------------------------------------
# Kernel
# ---------------------------------------------------------------------------
def _snapshotter_kernel(snap_ref, upd_ref, x_ref):
    """x = concat([snapshot, update], axis=-1) for one (rows, T) tile."""
    t_snap = snap_ref.shape[-1]
    # Two slice-stores straight from the inputs (no readback of the x tile).
    # The concat boundary is generally lane-unaligned (e.g. t_snap = 92), so
    # the update half lowers to a lane-rotate + masked store either way; the
    # snapshot half is an aligned full-lane store.  Casts are no-ops when the
    # dtypes already match (promotion happens in-register, never as an extra
    # HBM pass in the wrapper).
    # TODO(synk): if the caller can carry a 128-lane-padded state layout, both
    # stores become unmasked full-lane stores and the kernel is purely DMA-bound.
    x_ref[:, :t_snap] = snap_ref[...].astype(x_ref.dtype)
    x_ref[:, t_snap:] = upd_ref[...].astype(x_ref.dtype)


# ---------------------------------------------------------------------------
# Wrapper
# ---------------------------------------------------------------------------
def _sublane_granularity(*dtypes):
    """Minimum row granularity so every dtype packs full sublane tiles."""
    g = 1
    for d in dtypes:
        itemsize = jnp.dtype(d).itemsize
        g = math.lcm(g, 8 * max(1, 4 // itemsize))  # 8 f32 / 16 bf16 / 32 int8
    return g


def background_snapshotter(update, snapshot, state_size, *,
                           use_pallas=None, row_block=None):
    """update: (B, C, T_upd); snapshot: (B, C, T_snap) -> (x, new_snapshot)."""
    B, C, t_upd = update.shape
    Bs, Cs, t_snap = snapshot.shape
    assert (B, C) == (Bs, Cs), "update/snapshot batch+channel mismatch"
    t_total = t_snap + t_upd
    assert 0 < state_size <= t_total

    out_dtype = jnp.promote_types(update.dtype, snapshot.dtype)
    R = B * C
    snap_isz = jnp.dtype(snapshot.dtype).itemsize
    upd_isz = jnp.dtype(update.dtype).itemsize
    out_isz = jnp.dtype(out_dtype).itemsize
    row_bytes = t_snap * snap_isz + t_upd * upd_isz + t_total * out_isz
    total_bytes = R * row_bytes

    # Tiny shapes: custom-call launch overhead dwarfs the data movement; let
    # XLA's fused concat + slice handle it.
    if use_pallas is None:
        use_pallas = total_bytes >= (1 << 20)
    if not use_pallas:
        x = jnp.concatenate([snapshot, update], axis=-1).astype(out_dtype)
        return x, x[:, :, t_total - state_size:]

    # ---- Pallas path: flatten (B, C) -> rows so vregs are sublane-dense. ----
    snap2 = snapshot.reshape(R, t_snap)   # native dtypes; cast happens in-kernel
    upd2 = update.reshape(R, t_upd)

    g = _sublane_granularity(update.dtype, snapshot.dtype, out_dtype)

    if row_block is None:
        # ~6 MiB per step (x2 double-buffering ~= 12 MiB) is safe on v5e's
        # 16 MiB scoped default, v6e, and v7x's 64 MiB physical VMEM, while
        # being large enough for good DMA efficiency.
        budget = 6 << 20
        if R % g != 0 or R < 4 * g or total_bytes <= (2 << 20):
            row_block = R                          # single full block (tiny)
        else:
            rb_budget = max(g, (budget // row_bytes) // g * g)
            rb_steps = max(g, (R // 8) // g * g)   # aim for >= 8 pipelined steps
            rb = min(rb_budget, rb_steps)
            while R % rb != 0:                     # divisor of R -> no jnp.pad
                rb -= g
            row_block = rb
    else:
        assert row_block == R or (row_block % g == 0 and R % row_block == 0), (
            "row_block must equal R or be a multiple of the sublane "
            "granularity that divides R")

    grid = (R // row_block,)

    grid_spec = pltpu.PrefetchScalarGridSpec(
        num_scalar_prefetch=0,
        grid=grid,
        in_specs=[
            pl.BlockSpec((row_block, t_snap), lambda r: (r, 0)),
            pl.BlockSpec((row_block, t_upd), lambda r: (r, 0)),
        ],
        out_specs=pl.BlockSpec((row_block, t_total), lambda r: (r, 0)),
    )

    x2 = pl.pallas_call(
        _snapshotter_kernel,
        out_shape=jax.ShapeDtypeStruct((R, t_total), out_dtype),
        grid_spec=grid_spec,
        compiler_params=pltpu.CompilerParams(
            dimension_semantics=("parallel",),     # row blocks shard across TCs
            vmem_limit_bytes=32 << 20,
        ),
        cost_estimate=pl.CostEstimate(
            flops=0, transcendentals=0, bytes_accessed=int(total_bytes)),
    )(snap2, upd2)

    x = x2.reshape(B, C, t_total)
    # new_snapshot is byte-for-byte the trailing state_size columns of x:
    # slice it here instead of writing a second (duplicate) kernel output.
    new_snapshot = x[:, :, t_total - state_size:]
    return x, new_snapshot


class BackgroundSnapshotter:
    """JAX/Pallas port of buoy.utils.preprocessing.BackgroundSnapshotter."""

    def __init__(self, psd_length, kernel_length, fduration, sample_rate,
                 inference_sampling_rate, use_pallas=None):
        state_length = kernel_length + fduration + psd_length
        state_length -= 1 / inference_sampling_rate
        self.state_size = int(state_length * sample_rate)
        self.use_pallas = use_pallas

    def __call__(self, update, snapshot):
        return background_snapshotter(update, snapshot, self.state_size,
                                      use_pallas=self.use_pallas)


if __name__ == "__main__":
    # Small, deterministic configuration (state_size = int((6 - 0.25)*16) = 92).
    psd_length, kernel_length, fduration = 4.0, 1.0, 1.0
    sample_rate, inference_sampling_rate = 16, 4
    snapshotter = BackgroundSnapshotter(
        psd_length, kernel_length, fduration, sample_rate,
        inference_sampling_rate, use_pallas=True)   # force the Pallas kernel
    state_size = snapshotter.state_size

    key = jax.random.PRNGKey(0)
    k1, k2, k3, k4 = jax.random.split(key, 4)

    # --- Test 1: tiny streaming shape (single-block Pallas path) -----------
    B, C, t_upd = 2, 4, 32
    t_snap = state_size
    update = jax.random.normal(k1, (B, C, t_upd), dtype=jnp.float32)
    snapshot = jax.random.normal(k2, (B, C, t_snap), dtype=jnp.float32)
    x, new_snap = snapshotter(update, snapshot)
    jax.block_until_ready((x, new_snap))

    x_ref = jnp.concatenate([snapshot, update], axis=-1)
    assert x.shape == (B, C, t_snap + t_upd)
    assert new_snap.shape == (B, C, state_size)
    assert jnp.array_equal(x, x_ref)
    assert jnp.array_equal(new_snap, x_ref[:, :, -state_size:])

    # --- Test 2: multi-block grid path (forced row tiling) -----------------
    B2, C2 = 4, 16                       # R = 64 rows -> grid of 8 steps
    update2 = jax.random.normal(k3, (B2, C2, t_upd), dtype=jnp.float32)
    snapshot2 = jax.random.normal(k4, (B2, C2, t_snap), dtype=jnp.float32)
    x2, ns2 = background_snapshotter(update2, snapshot2, state_size,
                                     use_pallas=True, row_block=8)
    jax.block_until_ready((x2, ns2))
    x2_ref = jnp.concatenate([snapshot2, update2], axis=-1)
    assert jnp.array_equal(x2, x2_ref)
    assert jnp.array_equal(ns2, x2_ref[:, :, -state_size:])

    # --- Test 3: default auto path (tiny input -> XLA concat bypass) -------
    x3, ns3 = background_snapshotter(update, snapshot, state_size)
    jax.block_until_ready((x3, ns3))
    assert jnp.array_equal(x3, x_ref)
    assert jnp.array_equal(ns3, x_ref[:, :, -state_size:])

    print("KERNEL_OK")
</pallas_src>

<mosaic_0001>
module attributes {stable_mosaic.version = 11 : i64} {
  func.func @_snapshotter_kernel(%arg0: i32, %arg1: memref<8x92xf32, #tpu.memory_space<vmem>>, %arg2: memref<8x32xf32, #tpu.memory_space<vmem>>, %arg3: memref<8x124xf32, #tpu.memory_space<vmem>>) attributes {dimension_semantics = [#tpu.dimension_semantics<parallel>], iteration_bounds = array<i64: 1>, scalar_prefetch = 0 : i64, scratch_operands = 0 : i64, tpu.core_type = #tpu.core_type<tc>, window_params = [{transform_indices = @transform_0, window_bounds = array<i64: 8, 92>}, {transform_indices = @transform_1, window_bounds = array<i64: 8, 32>}, {transform_indices = @transform_2, window_bounds = array<i64: 8, 124>}]} {
    %c0 = arith.constant 0 : index
    %c0_0 = arith.constant 0 : index
    %0 = vector.load %arg1[%c0, %c0_0] : memref<8x92xf32, #tpu.memory_space<vmem>>, vector<8x92xf32>
    %c0_1 = arith.constant 0 : index
    %c0_2 = arith.constant 0 : index
    %1 = vector.load %arg3[%c0_1, %c0_2] : memref<8x124xf32, #tpu.memory_space<vmem>>, vector<8x92xf32>
    tpu.vector_store %arg3[%c0_1, %c0_2], %0 {strides = array<i32>} : memref<8x124xf32, #tpu.memory_space<vmem>>, vector<8x92xf32>,
    %c0_3 = arith.constant 0 : index
    %c0_4 = arith.constant 0 : index
    %2 = vector.load %arg2[%c0_3, %c0_4] : memref<8x32xf32, #tpu.memory_space<vmem>>, vector<8x32xf32>
    %c0_5 = arith.constant 0 : index
    %c92 = arith.constant 92 : index
    %3 = vector.load %arg3[%c0_5, %c92] : memref<8x124xf32, #tpu.memory_space<vmem>>, vector<8x32xf32>
    tpu.vector_store %arg3[%c0_5, %c92], %2 {strides = array<i32>} : memref<8x124xf32, #tpu.memory_space<vmem>>, vector<8x32xf32>,
    return
  }
  func.func @transform_0(%arg0: i32) -> (i32, i32) {
    %c0_i32 = arith.constant 0 : i32
    %c0_i32_0 = arith.constant 0 : i32
    return %arg0, %c0_i32 : i32, i32
  }
  func.func @transform_1(%arg0: i32) -> (i32, i32) {
    %c0_i32 = arith.constant 0 : i32
    %c0_i32_0 = arith.constant 0 : i32
    return %arg0, %c0_i32 : i32, i32
  }
  func.func @transform_2(%arg0: i32) -> (i32, i32) {
    %c0_i32 = arith.constant 0 : i32
    %c0_i32_0 = arith.constant 0 : i32
    return %arg0, %c0_i32 : i32, i32
  }
}

</mosaic_0001>

<bundles_post_ra>
// kernel: tpu_custom_call.1
= control target key start
LH: loop header
LB: loop body
LE: loop exit
PB: predicated region body
PF: predicated region fallthrough
CT: control target
= control target key end

     0   :  { %7 = vsyncpa [#allocation3], 0  ;;  %s193_s0 = inlined_call_operand.hbm [shape: f32[8,92], index: 0, kind: input, shape index: {}]   ;;  %s194_s1 = inlined_call_operand.hbm [shape: f32[8,32], index: 1, kind: input, shape index: {}]   ;;  %s195_s2 = inlined_call_operand.hbm [shape: f32[8,124], index: 2, kind: output, shape index: {}]  }
   0x1   :  { %8 = vsyncpa [#allocation6], 0 }
   0x2   :  { %9 = vsyncpa [#allocation4], 0  ;;  %s138_s9 = smov [#allocation2]   ;;  %s139_s11 = smov [#allocation5]  }
   0x3   :  { %s16_s10 = sshll.u32 %s138_s9, 4  ;;  %s26_s12 = sshll.u32 %s139_s11, 4  ;;  %s17_s10 = int_to_ptr.vmem [resolvable:$true] %s16_s10  ;;  %s27_s12 = int_to_ptr.vmem [resolvable:$true] %s26_s12 }
   0x4   :  { %s66_s15 = scalar_lea.hbm %s193_s0, 128 }
   0x5   :  { %p67_p0 = scmp.ne.s32.totalorder %s193_s0, %s66_s15  ;;  %p70_p1 = scmp.lt.u32.totalorder %s66_s15, %s193_s0 }
   0x7   :  { %p72_p2 = pnand %p70_p1, %p67_p0 }
   0x9   :  { %75 = shalt.err (!%p72_p2)
}
   0xa   :  { %s76_s20 = scalar_lea.vmem %s17_s10, 128  ;;  %p81_p4 = scmp.lt.s32.totalorder %s17_s10, %s17_s10 }
   0xb   :  { %p77_p3 = scmp.ne.s32.totalorder %s17_s10, %s76_s20  ;;  %p82_p5 = scmp.lt.s32.totalorder %s76_s20, %s76_s20 }
   0xd   :  { %p83_p6 = por %p82_p5, %p81_p4 }
   0xf   :  { %p84_p7 = pnand %p83_p6, %p77_p3 }
  0x11   :  { %87 = shalt.err (!%p84_p7)
}
  0x12   :  { %19 = dma.hbm_to_vmem [thread:$0]  %s193_s0, 128, %s17_s10, [#allocation3]  }
  0x13   :  { %s88_s25 = scalar_lea.hbm %s194_s1, 128 }
  0x14   :  { %p89_p8 = scmp.ne.s32.totalorder %s194_s1, %s88_s25  ;;  %p92_p9 = scmp.lt.u32.totalorder %s88_s25, %s194_s1 }
  0x16   :  { %p94_p10 = pnand %p92_p9, %p89_p8 }
  0x18   :  { %97 = shalt.err (!%p94_p10)
}
  0x19   :  { %s98_s30 = scalar_lea.vmem %s27_s12, 128  ;;  %p103_p12 = scmp.lt.s32.totalorder %s27_s12, %s27_s12 }
  0x1a   :  { %p99_p11 = scmp.ne.s32.totalorder %s27_s12, %s98_s30  ;;  %p104_p13 = scmp.lt.s32.totalorder %s98_s30, %s98_s30 }
  0x1c   :  { %p105_p0 = por %p104_p13, %p103_p12 }
  0x1e   :  { %p106_p1 = pnand %p105_p0, %p99_p11 }
  0x20   :  { %109 = shalt.err (!%p106_p1)
}
  0x21   :  { %29 = dma.hbm_to_vmem [thread:$0]  %s194_s1, 128, %s27_s12, [#allocation6]  }
  0x22   :  { %132 = dma.done.wait [#allocation3], 128  }
  0x23   :  { %133 = vsyncadd [#allocation3], 4294967168 }
  0x24   :  { %134 = dma.done.wait [#allocation6], 128  }
  0x25   :  { %135 = vsyncadd [#allocation6], 4294967168  ;;  %vm37_vm0 = vcmask 752640   ;;  %v39_v0 = vld [vmem:[#allocation5] sm:$0xff]  ;;  %v36_v1 = vld [vmem:[#allocation2] sm:$0xff]  ;;  %s140_s4 = smov 92  }
  0x26   :  { %41 = vrot.lane.b32.xlu0 %v39_v0, %s140_s4  ;;  %38 = vst.msk [vmem:[#allocation7] sm:$0xff] %vm37_vm0, %v36_v1  ;;  %s141_s5 = smov [#allocation7]   ;;  %vm44_vm1 = vcmask 1015520  }
  0x27   :  { %s52_s6 = sshll.u32 %s141_s5, 4  ;;  %s53_s6 = int_to_ptr.vmem [resolvable:$true] %s52_s6 }
  0x28   :  { %s110_s7 = scalar_lea.vmem %s53_s6, 128  ;;  %p115_p3 = scmp.lt.s32.totalorder %s53_s6, %s53_s6 }
  0x29   :  { %p111_p2 = scmp.ne.s32.totalorder %s53_s6, %s110_s7  ;;  %p116_p4 = scmp.lt.s32.totalorder %s110_s7, %s110_s7 }
  0x2b   :  { %p117_p5 = por %p116_p4, %p115_p3 }
  0x2d   :  { %p118_p6 = pnand %p117_p5, %p111_p2 }
  0x98   :  { %v42_v2 = vpop.permute.xlu0 %41 }
  0x99   :  { %45 = vst.msk [vmem:[#allocation7] sm:$0xff] %vm44_vm1, %v42_v2 }
  0x9a   :  { %121 = shalt.err (!%p118_p6)
}
  0x9b   :  { %s122_s9 = scalar_lea.hbm %s195_s2, 128 }
  0x9c   :  { %p123_p7 = scmp.ne.s32.totalorder %s195_s2, %s122_s9  ;;  %p126_p8 = scmp.lt.u32.totalorder %s122_s9, %s195_s2 }
  0x9e   :  { %p128_p9 = pnand %p126_p8, %p123_p7 }
  0xa0   :  { %131 = shalt.err (!%p128_p9)
}
  0xa1   :  { %55 = dma.vmem_to_hbm [thread:$0]  %s53_s6, 128, %s195_s2, [#allocation4]  }
  0xa2   :  { %136 = dma.done.wait [#allocation4], 128  }
  0xa3   :  { %137 = vsyncadd [#allocation4], 4294967168 }
  0xa4   :  { %59 = vsyncpa [#allocation3], 1 }
  0xa5   :  { %60 = vsyncpa [#allocation6], 1 }
  0xa6   :  { %61 = vsyncpa [#allocation4], 1 }

</bundles_post_ra>
